<compile_context>
chip_gen: v6e
topology: v6e:2x2x1
jax: 0.10.0
libtpu: 0.0.40
codegen_flags: <defaults>
</compile_context>

<pallas_src>
import functools

import jax
import jax.numpy as jnp
from jax.experimental import pallas as pl
from jax.experimental.pallas import tpu as pltpu

_LANE = 128
_SUBLANE_F32 = 8
_SUBLANE_BF16 = 16


def _round_up(n, m):
    return ((n + m - 1) // m) * m


def _vmem_cap_bytes():
    """Generation-aware usable-VMEM cap (leave ~18% headroom for compiler scratch)."""
    get_info = getattr(pltpu, "get_tpu_info", None)
    if get_info is not None:
        try:
            cap = int(get_info().vmem_capacity_bytes)
            if cap > 0:
                return int(cap * 0.82)  # v7x: ~52 MiB; v5e/v6e: ~105 MiB
        except Exception:
            pass
    return 52 * 1024 * 1024  # conservative fallback ~ v7x usable budget


def _bf16_vpu_available():
    """v6e/v7x VPUs handle bf16 natively; keep the epilogue in f32 on v5e and older."""
    try:
        kind = jax.devices()[0].device_kind.lower()
    except Exception:
        return False
    return not any(v in kind for v in ("v2", "v3", "v4", "v5"))


# ----------------------------------------------------------------------------
# Kernels
# ----------------------------------------------------------------------------
def _head_kernel_resident(x_ref, w1_ref, b1_ref, w2_ref, b2_ref, o_ref, *,
                          compute_dtype, epilogue_dtype):
    # x arrives in its native dtype; cast in-register (hides under the MXU).
    h = jnp.dot(x_ref[...].astype(compute_dtype), w1_ref[...],
                preferred_element_type=jnp.float32)            # MXU, f32 acc
    h = jnp.maximum(h.astype(epilogue_dtype)
                    + b1_ref[...].astype(epilogue_dtype), 0.0)  # bias + ReLU (VPU)
    logits = jnp.dot(h.astype(compute_dtype), w2_ref[...],
                     preferred_element_type=jnp.float32)        # MXU, f32 acc
    logits = logits + b2_ref[...]
    o_ref[...] = jax.nn.sigmoid(logits).astype(o_ref.dtype)     # EUP; lane-dense store


def _head_kernel_ksplit(x_ref, w1_ref, b1_ref, w2_ref, b2_ref, o_ref, acc_ref, *,
                        compute_dtype, epilogue_dtype):
    # K (=input_size) streamed on the last grid axis; h accumulated in f32 VMEM.
    k = pl.program_id(1)

    @pl.when(k == 0)
    def _():
        acc_ref[...] = jnp.zeros_like(acc_ref)

    acc_ref[...] += jnp.dot(x_ref[...].astype(compute_dtype), w1_ref[...],
                            preferred_element_type=jnp.float32)

    @pl.when(k == pl.num_programs(1) - 1)
    def _():
        h = jnp.maximum(acc_ref[...].astype(epilogue_dtype)
                        + b1_ref[...].astype(epilogue_dtype), 0.0)
        logits = jnp.dot(h.astype(compute_dtype), w2_ref[...],
                         preferred_element_type=jnp.float32) + b2_ref[...]
        o_ref[...] = jax.nn.sigmoid(logits).astype(o_ref.dtype)


# ----------------------------------------------------------------------------
# Parameter preparation (done ONCE, not per forward)
# ----------------------------------------------------------------------------
def prepare_params(w1, b1, w2, b2, *, compute_dtype=jnp.bfloat16):
    """Pad/cast the head parameters once.

    w1: (F, H), b1: (H,)/(1,H), w2: (H, C), b2: (C,)/(1,C).
    H and C are zero-padded to multiples of 128 (lane-dense MXU and stores).
    Zero-padded hidden lanes give relu(0 + 0) = 0 and the matching W2 rows are
    zero, so they contribute nothing; padded class lanes are sliced off.
    """
    F, H = w1.shape
    C = w2.shape[1]
    Hp = _round_up(H, _LANE)
    Cp = _round_up(C, _LANE)
    w1p = jnp.pad(w1, ((0, 0), (0, Hp - H))).astype(compute_dtype)
    w2p = jnp.pad(w2, ((0, Hp - H), (0, Cp - C))).astype(compute_dtype)
    b1p = jnp.pad(jnp.reshape(b1, (1, H)).astype(jnp.float32), ((0, 0), (0, Hp - H)))
    b2p = jnp.pad(jnp.reshape(b2, (1, C)).astype(jnp.float32), ((0, 0), (0, Cp - C)))
    return {"w1": w1p, "b1": b1p, "w2": w2p, "b2": b2p,
            "input_size": F, "hidden": H, "num_classes": C}


# ----------------------------------------------------------------------------
# Forward
# ----------------------------------------------------------------------------
def classification_head(x, params, *, block_b=None, epilogue_dtype=None,
                        force_tk=None):
    """sigmoid(relu(x @ W1 + b1) @ W2 + b2) with pre-prepared (padded) params.

    x: (B, F) in its native dtype. Returns (B, num_classes) in x.dtype.
    """
    w1, b1, w2, b2 = params["w1"], params["b1"], params["w2"], params["b2"]
    C = params["num_classes"]
    H = params["hidden"]
    B, F = x.shape
    Fw, Hp = w1.shape
    assert F == Fw, "x feature dim must match prepared W1"
    Cp = w2.shape[1]

    out_dtype = x.dtype
    compute_dtype = w1.dtype
    csize = jnp.dtype(compute_dtype).itemsize
    xsize = jnp.dtype(x.dtype).itemsize
    osize = jnp.dtype(out_dtype).itemsize

    if epilogue_dtype is None:
        # bf16 bias+ReLU over the (TB, Hp) intermediate on bf16-VPU chips (v6e/v7x).
        epilogue_dtype = (jnp.bfloat16
                          if (compute_dtype == jnp.bfloat16 and _bf16_vpu_available())
                          else jnp.float32)
    esize = jnp.dtype(epilogue_dtype).itemsize

    cap = _vmem_cap_bytes()
    pack = _SUBLANE_BF16 if compute_dtype == jnp.bfloat16 else _SUBLANE_F32

    def est_bytes(tb, tk):
        # Honest footprint: constant-index weight/bias blocks are still
        # double-buffered by default BlockSpec pipelining -> count them 2x.
        w1_blocks = 2 * tk * Hp * csize
        w2_blocks = 2 * Hp * Cp * csize
        bias_blocks = 2 * (Hp + Cp) * 4
        x_blocks = 2 * tb * tk * xsize
        o_blocks = 2 * tb * Cp * osize
        acc = tb * Hp * 4                         # f32 accumulator / matmul result
        inter = tb * Hp * esize + tb * Cp * 4     # epilogue intermediates
        return w1_blocks + w2_blocks + bias_blocks + x_blocks + o_blocks + acc + inter

    # ---- K (=F) tiling: resident W1 when it fits the per-generation budget,
    # ---- otherwise stream K with an accumulator (matters on v7x's 64 MiB). ---
    tk = F
    if force_tk is not None:
        tk = int(force_tk)
    elif F % _LANE == 0 and est_bytes(256, F) > cap:
        for cand in (2048, 1024, 512, 256, 128):
            if F % cand == 0 and est_bytes(256, cand) <= cap:
                tk = cand
                break
    k_split = tk != F
    if k_split:
        assert F % tk == 0 and tk % _LANE == 0, "K-split requires 128-aligned tk | F"

    # ---- batch tile: as large as the VMEM budget allows (v5e/v6e benefit most).
    if block_b is None:
        block_b = 128
        for cand in (1024, 512, 256, 128):
            if est_bytes(cand, tk) <= cap:
                block_b = cand
                break
    TB = block_b if B >= block_b else _round_up(max(B, 1), pack)
    # v7x megacore: ensure >= 2 batch tiles so both TensorCores get work
    # (near-free on single-TC v5e/v6e).
    if B > 2 * pack and pl.cdiv(B, TB) < 2:
        TB = _round_up(pl.cdiv(B, 2), pack)
    num_b_tiles = pl.cdiv(B, TB)
    # NOTE: the fringe batch block (B % TB != 0) reads undefined rows; rows are
    # independent and out-of-bounds output rows are never written back.

    vmem_limit = int(min(max(int(1.5 * est_bytes(TB, tk)), 16 * 1024 * 1024), cap))

    cost = pl.CostEstimate(
        flops=2 * B * (F * H + H * C),
        transcendentals=B * C,
        bytes_accessed=(x.size * xsize + w1.size * csize + w2.size * csize
                        + (Hp + Cp) * 4 + B * Cp * osize),
    )

    if not k_split:
        kernel = functools.partial(_head_kernel_resident,
                                   compute_dtype=compute_dtype,
                                   epilogue_dtype=epilogue_dtype)
        grid = (num_b_tiles,)
        in_specs = [
            pl.BlockSpec((TB, F), lambda i: (i, 0)),    # x: batch-tiled, native dtype
            pl.BlockSpec((F, Hp), lambda i: (0, 0)),    # W1: VMEM-resident
            pl.BlockSpec((1, Hp), lambda i: (0, 0)),    # b1: VMEM-resident
            pl.BlockSpec((Hp, Cp), lambda i: (0, 0)),   # W2: VMEM-resident
            pl.BlockSpec((1, Cp), lambda i: (0, 0)),    # b2: VMEM-resident
        ]
        out_specs = pl.BlockSpec((TB, Cp), lambda i: (i, 0))
        scratch_shapes = []
        dims = ("parallel",)
    else:
        kernel = functools.partial(_head_kernel_ksplit,
                                   compute_dtype=compute_dtype,
                                   epilogue_dtype=epilogue_dtype)
        grid = (num_b_tiles, F // tk)
        in_specs = [
            pl.BlockSpec((TB, tk), lambda i, k: (i, k)),   # x: batch x K tiles
            pl.BlockSpec((tk, Hp), lambda i, k: (k, 0)),   # W1: streamed along K
            pl.BlockSpec((1, Hp), lambda i, k: (0, 0)),
            pl.BlockSpec((Hp, Cp), lambda i, k: (0, 0)),
            pl.BlockSpec((1, Cp), lambda i, k: (0, 0)),
        ]
        out_specs = pl.BlockSpec((TB, Cp), lambda i, k: (i, 0))
        scratch_shapes = [pltpu.VMEM((TB, Hp), jnp.float32)]
        dims = ("parallel", "arbitrary")

    out = pl.pallas_call(
        kernel,
        out_shape=jax.ShapeDtypeStruct((B, Cp), out_dtype),
        grid_spec=pltpu.PrefetchScalarGridSpec(
            num_scalar_prefetch=0,
            grid=grid,
            in_specs=in_specs,
            out_specs=out_specs,
            scratch_shapes=scratch_shapes,
        ),
        compiler_params=pltpu.CompilerParams(
            dimension_semantics=dims,
            vmem_limit_bytes=vmem_limit,
        ),
        cost_estimate=cost,
    )(x, w1, b1, w2, b2)

    return out[:, :C]


# ----------------------------------------------------------------------------
# Reference & synthetic init
# ----------------------------------------------------------------------------
def init_params(key, input_size, num_classes, hidden_sizes=None):
    """Synthetic init matching nn.Linear (uniform +/- 1/sqrt(fan_in)); weights
    already stored in (in, out) kernel layout."""
    if hidden_sizes is None:
        hidden_sizes = [input_size // 2]
    assert len(hidden_sizes) == 1, "default config: single hidden layer"
    h = hidden_sizes[0]
    k1, k2, k3, k4 = jax.random.split(key, 4)
    bound1 = 1.0 / jnp.sqrt(input_size)
    bound2 = 1.0 / jnp.sqrt(h)
    w1 = jax.random.uniform(k1, (input_size, h), jnp.float32, -bound1, bound1)
    b1 = jax.random.uniform(k2, (1, h), jnp.float32, -bound1, bound1)
    w2 = jax.random.uniform(k3, (h, num_classes), jnp.float32, -bound2, bound2)
    b2 = jax.random.uniform(k4, (1, num_classes), jnp.float32, -bound2, bound2)
    return w1, b1, w2, b2


def reference(x, w1, b1, w2, b2):
    h = jnp.maximum(x @ w1 + b1, 0.0)
    return jax.nn.sigmoid(h @ w2 + b2)


if __name__ == "__main__":
    # --- demo shape consistent with the module: input_size=32, hidden=[16], 8 classes
    input_size = 32
    num_classes = 8
    batch = 2

    key = jax.random.PRNGKey(0)
    kx, kp = jax.random.split(key)
    x = jax.random.normal(kx, (batch, input_size), jnp.float32)
    w1, b1, w2, b2 = init_params(kp, input_size, num_classes)
    ref = reference(x, w1, b1, w2, b2)

    # Default path: weights prepared (padded + bf16-cast) once, resident-W1 kernel.
    params_bf16 = prepare_params(w1, b1, w2, b2, compute_dtype=jnp.bfloat16)
    out_bf16 = jax.block_until_ready(classification_head(x, params_bf16))
    assert out_bf16.shape == (batch, num_classes)
    assert out_bf16.dtype == x.dtype
    assert jnp.allclose(out_bf16, ref, atol=2e-2, rtol=2e-2)

    # Full-f32 path for a tight numerical check.
    params_f32 = prepare_params(w1, b1, w2, b2, compute_dtype=jnp.float32)
    out_f32 = jax.block_until_ready(
        classification_head(x, params_f32, epilogue_dtype=jnp.float32))
    assert jnp.allclose(out_f32, ref, atol=1e-5, rtol=1e-5)

    # Exercise the K-split (streamed-W1 + accumulator) path used when W1 cannot
    # stay VMEM-resident (e.g. large F/H on v7x): force tk < F at a small,
    # 128-aligned shape and check against the reference.
    input_size2, hidden2, num_classes2, batch2 = 256, 128, 8, 64
    kx2, kp2 = jax.random.split(jax.random.PRNGKey(1))
    x2 = jax.random.normal(kx2, (batch2, input_size2), jnp.float32)
    w1b, b1b, w2b, b2b = init_params(kp2, input_size2, num_classes2, [hidden2])
    ref2 = reference(x2, w1b, b1b, w2b, b2b)
    params2 = prepare_params(w1b, b1b, w2b, b2b, compute_dtype=jnp.float32)
    out2 = jax.block_until_ready(
        classification_head(x2, params2, epilogue_dtype=jnp.float32, force_tk=128))
    assert out2.shape == (batch2, num_classes2)
    assert jnp.allclose(out2, ref2, atol=1e-5, rtol=1e-5)

    print("KERNEL_OK")
</pallas_src>

<mosaic_0001>
module attributes {stable_mosaic.version = 11 : i64} {
  func.func @_head_kernel_resident(%arg0: i32, %arg1: memref<16x32xf32, #tpu.memory_space<vmem>>, %arg2: memref<32x128xbf16, #tpu.memory_space<vmem>>, %arg3: memref<1x128xf32, #tpu.memory_space<vmem>>, %arg4: memref<128x128xbf16, #tpu.memory_space<vmem>>, %arg5: memref<1x128xf32, #tpu.memory_space<vmem>>, %arg6: memref<16x128xf32, #tpu.memory_space<vmem>>) attributes {dimension_semantics = [#tpu.dimension_semantics<parallel>], iteration_bounds = array<i64: 1>, scalar_prefetch = 0 : i64, scratch_operands = 0 : i64, tpu.core_type = #tpu.core_type<tc>, window_params = [{transform_indices = @transform_0, window_bounds = array<i64: 16, 32>}, {pipeline_mode = #tpu.pipeline_mode<synchronous>, transform_indices = @transform_1, window_bounds = array<i64: 32, 128>}, {pipeline_mode = #tpu.pipeline_mode<synchronous>, transform_indices = @transform_2, window_bounds = array<i64: 1, 128>}, {pipeline_mode = #tpu.pipeline_mode<synchronous>, transform_indices = @transform_3, window_bounds = array<i64: 128, 128>}, {pipeline_mode = #tpu.pipeline_mode<synchronous>, transform_indices = @transform_4, window_bounds = array<i64: 1, 128>}, {transform_indices = @transform_5, window_bounds = array<i64: 16, 128>}]} {
    %c0 = arith.constant 0 : index
    %c0_0 = arith.constant 0 : index
    %0 = vector.load %arg1[%c0, %c0_0] : memref<16x32xf32, #tpu.memory_space<vmem>>, vector<16x32xf32>
    %1 = arith.truncf %0 : vector<16x32xf32> to vector<16x32xbf16>
    %c0_1 = arith.constant 0 : index
    %c0_2 = arith.constant 0 : index
    %2 = vector.load %arg2[%c0_1, %c0_2] : memref<32x128xbf16, #tpu.memory_space<vmem>>, vector<32x128xbf16>
    %cst = arith.constant dense<0.000000e+00> : vector<16x128xf32>
    %3 = tpu.matmul %1, %2, %cst {dimension_numbers = #tpu.dot_dimension_numbers<[1], [0], [0], [1], [0, 0, 1, 1], [], []>} : vector<16x32xbf16>, vector<32x128xbf16>, vector<16x128xf32> -> vector<16x128xf32>
    %4 = arith.truncf %3 : vector<16x128xf32> to vector<16x128xbf16>
    %c0_3 = arith.constant 0 : index
    %c0_4 = arith.constant 0 : index
    %5 = vector.load %arg3[%c0_3, %c0_4] : memref<1x128xf32, #tpu.memory_space<vmem>>, vector<1x128xf32>
    %6 = arith.truncf %5 : vector<1x128xf32> to vector<1x128xbf16>
    %7 = vector.broadcast %6 : vector<1x128xbf16> to vector<16x128xbf16>
    %8 = arith.addf %4, %7 : vector<16x128xbf16>
    %cst_5 = arith.constant 0.000000e+00 : bf16
    %9 = vector.broadcast %cst_5 : bf16 to vector<16x128xbf16>
    %10 = arith.maximumf %8, %9 : vector<16x128xbf16>
    %c0_6 = arith.constant 0 : index
    %c0_7 = arith.constant 0 : index
    %11 = vector.load %arg4[%c0_6, %c0_7] : memref<128x128xbf16, #tpu.memory_space<vmem>>, vector<128x128xbf16>
    %cst_8 = arith.constant dense<0.000000e+00> : vector<16x128xf32>
    %12 = tpu.matmul %10, %11, %cst_8 {dimension_numbers = #tpu.dot_dimension_numbers<[1], [0], [0], [1], [0, 0, 1, 1], [], []>} : vector<16x128xbf16>, vector<128x128xbf16>, vector<16x128xf32> -> vector<16x128xf32>
    %c0_9 = arith.constant 0 : index
    %c0_10 = arith.constant 0 : index
    %13 = vector.load %arg5[%c0_9, %c0_10] : memref<1x128xf32, #tpu.memory_space<vmem>>, vector<1x128xf32>
    %14 = vector.broadcast %13 : vector<1x128xf32> to vector<16x128xf32>
    %15 = arith.addf %12, %14 : vector<16x128xf32>
    %16 = arith.negf %15 : vector<16x128xf32>
    %17 = math.exp %16 : vector<16x128xf32>
    %cst_11 = arith.constant 1.000000e+00 : f32
    %18 = vector.broadcast %cst_11 : f32 to vector<16x128xf32>
    %19 = arith.addf %18, %17 : vector<16x128xf32>
    %20 = arith.divf %18, %19 : vector<16x128xf32>
    %c0_12 = arith.constant 0 : index
    %c0_13 = arith.constant 0 : index
    %21 = vector.load %arg6[%c0_12, %c0_13] : memref<16x128xf32, #tpu.memory_space<vmem>>, vector<16x128xf32>
    tpu.vector_store %arg6[%c0_12, %c0_13], %20 {strides = array<i32>} : memref<16x128xf32, #tpu.memory_space<vmem>>, vector<16x128xf32>,
    return
  }
  func.func @transform_0(%arg0: i32) -> (i32, i32) {
    %c0_i32 = arith.constant 0 : i32
    %c0_i32_0 = arith.constant 0 : i32
    return %arg0, %c0_i32 : i32, i32
  }
  func.func @transform_1(%arg0: i32) -> (i32, i32) {
    %c0_i32 = arith.constant 0 : i32
    %c0_i32_0 = arith.constant 0 : i32
    %c0_i32_1 = arith.constant 0 : i32
    return %c0_i32, %c0_i32_0 : i32, i32
  }
  func.func @transform_2(%arg0: i32) -> (i32, i32) {
    %c0_i32 = arith.constant 0 : i32
    %c0_i32_0 = arith.constant 0 : i32
    %c0_i32_1 = arith.constant 0 : i32
    return %c0_i32, %c0_i32_0 : i32, i32
  }
  func.func @transform_3(%arg0: i32) -> (i32, i32) {
    %c0_i32 = arith.constant 0 : i32
    %c0_i32_0 = arith.constant 0 : i32
    %c0_i32_1 = arith.constant 0 : i32
    return %c0_i32, %c0_i32_0 : i32, i32
  }
  func.func @transform_4(%arg0: i32) -> (i32, i32) {
    %c0_i32 = arith.constant 0 : i32
    %c0_i32_0 = arith.constant 0 : i32
    %c0_i32_1 = arith.constant 0 : i32
    return %c0_i32, %c0_i32_0 : i32, i32
  }
  func.func @transform_5(%arg0: i32) -> (i32, i32) {
    %c0_i32 = arith.constant 0 : i32
    %c0_i32_0 = arith.constant 0 : i32
    return %arg0, %c0_i32 : i32, i32
  }
}

</mosaic_0001>

<bundles_post_ra>
// kernel: tpu_custom_call.1
= control target key start
LH: loop header
LB: loop body
LE: loop exit
PB: predicated region body
PF: predicated region fallthrough
CT: control target
= control target key end

     0   :  { %10 = vsyncpa [#allocation3], 0  ;;  %s523_s0 = inlined_call_operand.hbm [shape: f32[2,32], index: 0, kind: input, shape index: {}]   ;;  %s524_s1 = inlined_call_operand.hbm [shape: bf16[32,128], index: 1, kind: input, shape index: {}]   ;;  %s525_s2 = inlined_call_operand.vmem [shape: f32[1,128], index: 2, kind: input, shape index: {}]   ;;  %s526_s3 = inlined_call_operand.hbm [shape: bf16[128,128], index: 3, kind: input, shape index: {}]   ;;  %s527_s4 = inlined_call_operand.vmem [shape: f32[1,128], index: 4, kind: input, shape index: {}]   ;;  %s528_s5 = inlined_call_operand.hbm [shape: f32[2,128], index: 5, kind: output, shape index: {}]  }
   0x1   :  { %11 = vsyncpa [#allocation6], 0 }
   0x2   :  { %12 = vsyncpa [#allocation4], 0 }
   0x3   :  { %17 = vsyncadd [#allocation3], 224  ;;  %s452_s18 = smov [#allocation5]  }
   0x4   :  { %s30_s19 = sshll.u32 %s452_s18, 4  ;;  %s31_s19 = int_to_ptr.vmem [resolvable:$true] %s30_s19 }
   0x5   :  { %s374_s20 = scalar_lea.vmem %s31_s19, 256  ;;  %p379_p1 = scmp.lt.s32.totalorder %s31_s19, %s31_s19 }
   0x6   :  { %p375_p0 = scmp.ne.s32.totalorder %s31_s19, %s374_s20  ;;  %p380_p2 = scmp.lt.s32.totalorder %s374_s20, %s374_s20 }
   0x8   :  { %p381_p3 = por %p380_p2, %p379_p1 }
   0xa   :  { %p382_p4 = pnand %p381_p3, %p375_p0 }
   0xc   :  { %385 = shalt.err (!%p382_p4)
}
   0xd   :  { %s453_s21 = smov 64   ;;  %s454_s22 = smov 4  }
   0xe   :  { %36 = dma.hbm_to_vmem [thread:$0]  %s524_s1, 256, %s31_s19, [#allocation6], %s453_s21, %s453_s21, %s454_s22  }
   0xf   :  { %s455_s25 = smov [#allocation2]  }
  0x10   :  { %s18_s26 = sshll.u32 %s455_s25, 4  ;;  %s19_s26 = int_to_ptr.vmem [resolvable:$true] %s18_s26 }
  0x11   :  { %s394_s27 = scalar_lea.vmem %s19_s26, 32  ;;  %s398_s28 = scalar_lea.vmem %s19_s26, 256 }
  0x12   :  { %p395_p5 = scmp.ne.s32.totalorder %s19_s26, %s394_s27  ;;  %p399_p6 = scmp.lt.s32.totalorder %s19_s26, %s19_s26 }
  0x13   :  { %p400_p7 = scmp.lt.s32.totalorder %s398_s28, %s394_s27 }
  0x15   :  { %p401_p8 = por %p400_p7, %p399_p6 }
  0x17   :  { %p402_p9 = pnand %p401_p8, %p395_p5 }
  0x19   :  { %405 = shalt.err (!%p402_p9)
}
  0x1a   :  { %s456_s29 = smov 32   ;;  %s457_s30 = smov 2  }
  0x1b   :  { %24 = dma.hbm_to_vmem [thread:$0]  %s523_s0, 32, %s19_s26, [#allocation3], %s456_s29, %s456_s29, %s457_s30  }
  0x1c   :  { %s458_s1 = smov [#allocation7]  }
  0x1d   :  { %s44_s8 = sshll.u32 %s458_s1, 4  ;;  %s45_s8 = int_to_ptr.vmem [resolvable:$true] %s44_s8 }
  0x1e   :  { %s414_s9 = scalar_lea.vmem %s45_s8, 1024  ;;  %p419_p11 = scmp.lt.s32.totalorder %s45_s8, %s45_s8 }
  0x1f   :  { %p415_p10 = scmp.ne.s32.totalorder %s45_s8, %s414_s9  ;;  %p420_p12 = scmp.lt.s32.totalorder %s414_s9, %s414_s9 }
  0x21   :  { %p421_p13 = por %p420_p12, %p419_p11 }
  0x23   :  { %p422_p0 = pnand %p421_p13, %p415_p10 }
  0x25   :  { %425 = shalt.err (!%p422_p0)
}
  0x26   :  { %50 = dma.hbm_to_vmem [thread:$0]  %s526_s3, 1024, %s45_s8, [#allocation6], %s453_s21, %s453_s21, %s454_s22  }
  0x27   :  { %446 = dma.done.wait [#allocation3], 256  }
  0x28   :  { %447 = vsyncadd [#allocation3], 4294967040 }
  0x29   :  { %448 = dma.done.wait [#allocation6], 1280  }
  0x2a   :  { %449 = vsyncadd [#allocation6], 4294966016  ;;  %v459_v0 = vmov 0.0   ;;  %vm460_vm0 = vmmov 0   ;;  %v348_v1 = vld [vmem:[#allocation5 + $0x8] sm:$0xff]   ;;  %v349_v2 = vld [vmem:[#allocation5] sm:$0xff]   ;;  %v133_v14 = vlaneseq }
  0x2b   :  { %309 = vmatprep.subr.bf16.mxu0 %v459_v0  ;;  %313 = vmatprep.mubr.msk.bf16.mxu0 %vm460_vm0, %v459_v0  ;;  %v63_v3 = vld [vmem:[#allocation2] sm:$0xff]  ;;  %v64_v4 = vld [vmem:[#allocation2 + $0x8] sm:$0xff]  ;;  %v350_v5 = vld [vmem:[#allocation7 + $0x38] sm:$0xff]   ;;  %vm82_vm1 = vcmask 261120   ;;  %v461_v27 = vmov 0  }
  0x2c   :  { %317 = vmatprep.subr.bf16.mxu1 %v459_v0  ;;  %333 = vmatprep.mubr.msk.bf16.mxu1 %vm460_vm0, %v459_v0  ;;  %v65_v6 = vpack.c.bf16 %v64_v4, %v63_v3  ;;  %v351_v7 = vld [vmem:[#allocation7 + $0x30] sm:$0xff]   ;;  %v352_v8 = vld [vmem:[#allocation7 + $0x28] sm:$0xff]   ;;  %v353_v9 = vld [vmem:[#allocation7 + $0x20] sm:$0xff]   ;;  %v134_v17 = vshrl.u32 %v133_v14, 7 }
  0x2d   :  { %310 = vmatpush3.bf16.msra.mxu0 %v348_v1  ;;  %318 = vmatpush3.bf16.msra.mxu1 %v350_v5  ;;  %v354_v10 = vld [vmem:[#allocation7 + $0x18] sm:$0xff]   ;;  %v355_v11 = vld [vmem:[#allocation7 + $0x10] sm:$0xff]   ;;  %v356_v12 = vld [vmem:[#allocation7 + $0x8] sm:$0xff]  }
  0x2e   :  { %311 = vmatprep.subr.bf16.mxu0 %v459_v0  ;;  %319 = vmatprep.subr.bf16.mxu1 %v459_v0  ;;  %v357_v13 = vld [vmem:[#allocation7] sm:$0xff]   ;;  %v135_v19 = vsub.s32 0, %v134_v17 }
  0x2f   :  { %v128_v15 = vld [vmem:[%s525_s2] sm:$0x1] }
  0x30   :  { %v129_v16 = vpack.c.bf16 %v128_v15, %v128_v15  ;;  %v286_v29 = vld [vmem:[%s527_s4] ss:$0 sm:$0xff] }
  0x31   :  { %312 = vmatpush3.bf16.msra.mxu0 %v349_v2  ;;  %320 = vmatpush3.bf16.msra.mxu1 %v351_v7 }
  0x32   :  { %321 = vmatprep.subr.bf16.mxu1 %v459_v0  ;;  %v131_v18 = vpack.i.b16 %v129_v16, %v129_v16 }
  0x34   :  { %314 = vmatmul.mubr.msk.bf16.vlgmr.msra.gmra.mxu0 %vm82_vm1, %v65_v6  ;;  %v136_v22 = vrot.slane %v131_v18, %v135_v19 }
  0x35   :  { %322 = vmatpush3.bf16.msra.mxu1 %v352_v8 }
  0x36   :  { %323 = vmatprep.subr.bf16.mxu1 %v459_v0 }
  0x39   :  { %324 = vmatpush3.bf16.msra.mxu1 %v353_v9 }
  0x3a   :  { %325 = vmatprep.subr.bf16.mxu1 %v459_v0 }
  0x3d   :  { %326 = vmatpush3.bf16.msra.mxu1 %v354_v10 }
  0x3e   :  { %327 = vmatprep.subr.bf16.mxu1 %v459_v0 }
  0x41   :  { %328 = vmatpush3.bf16.msra.mxu1 %v355_v11 }
  0x42   :  { %329 = vmatprep.subr.bf16.mxu1 %v459_v0 }
  0x45   :  { %330 = vmatpush3.bf16.msra.mxu1 %v356_v12 }
  0x46   :  { %331 = vmatprep.subr.bf16.mxu1 %v459_v0 }
  0x49   :  { %332 = vmatpush3.bf16.msra.mxu1 %v357_v13 }
  0xf4   :  { %v120_v20 = vpop.f32.mrf.mxu0 }
  0xf6   :  { %v315_v21 = vpop.f32.mrf.mxu0 }
  0xf8   :  { %v123_v23 = vpop.f32.mrf.mxu0 }
  0xf9   :  { %v127_v24 = vpack.c.bf16 %v123_v23, %v120_v20 }
  0xfa   :  { %v316_v25 = vpop.f32.mrf.mxu0 }
  0xfb   :  { %v137_v26 = vadd.bf16 %v136_v22, %v127_v24 }
  0xfd   :  { %v138_v28 = vmax.bf16 %v461_v27, %v137_v26 }
  0xff   :  { %334 = vmatmul.mubr.bf16.vlgmr.msra.gmra.mxu1 %v138_v28 }
 0x1bf   :  { %v244_v30 = vpop.f32.mrf.mxu1 }
 0x1c0   :  { %v245_v31 = vadd.f32 %v286_v29, %v244_v30 }
 0x1c1   :  { %v335_v32 = vpop.f32.mrf.mxu1 }
 0x1c2   :  { %v295_v33 = vmul.f32 -1.442695, %v245_v31 }
 0x1c3   :  { %v247_v34 = vpop.f32.mrf.mxu1 }
 0x1c4   :  { %358 = vpow2.f32 %v295_v33  ;;  %v248_v35 = vadd.f32 %v286_v29, %v247_v34 }
 0x1c5   :  { %v336_v36 = vpop.f32.mrf.mxu1 }
 0x1c6   :  { %v296_v37 = vmul.f32 -1.442695, %v248_v35 }
 0x1c8   :  { %360 = vpow2.f32 %v296_v37 }
 0x1d1   :  { %v359_v38 = vpop.eup %358 }
 0x1d2   :  { %v257_v39 = vadd.f32 1.0, %v359_v38 }
 0x1d4   :  { %362 = vrcp.f32 %v257_v39 }
 0x1d5   :  { %v361_v40 = vpop.eup %360 }
 0x1d6   :  { %v258_v41 = vadd.f32 1.0, %v361_v40 }
 0x1d8   :  { %364 = vrcp.f32 %v258_v41 }
 0x1e1   :  { %v363_v42 = vpop.eup %362 }
 0x1e2   :  { %263 = vst [vmem:[#allocation8] sm:$0xff] %v363_v42 }
 0x1e5   :  { %v365_v43 = vpop.eup %364 }
 0x1e6   :  { %264 = vst [vmem:[#allocation8 + $0x8] sm:$0xff] %v365_v43 }
 0x1e7   :  { %269 = vsyncadd [#allocation4], 224  ;;  %s462_s2 = smov [#allocation8]  }
 0x1e8   :  { %s270_s4 = sshll.u32 %s462_s2, 4  ;;  %s271_s4 = int_to_ptr.vmem [resolvable:$true] %s270_s4 }
 0x1e9   :  { %s426_s14 = scalar_lea.vmem %s271_s4, 32  ;;  %s430_s15 = scalar_lea.vmem %s271_s4, 256 }
 0x1ea   :  { %p427_p1 = scmp.ne.s32.totalorder %s271_s4, %s426_s14  ;;  %p431_p2 = scmp.lt.s32.totalorder %s271_s4, %s271_s4 }
 0x1eb   :  { %p432_p3 = scmp.lt.s32.totalorder %s430_s15, %s426_s14 }
 0x1ed   :  { %p433_p4 = por %p432_p3, %p431_p2 }
 0x1ef   :  { %p434_p5 = pnand %p433_p4, %p427_p1 }
 0x1f1   :  { %437 = shalt.err (!%p434_p5)
}
 0x1f2   :  { %276 = dma.vmem_to_hbm [thread:$0]  %s271_s4, 32, %s528_s5, [#allocation4], %s456_s29, %s456_s29, %s457_s30  }
 0x1f3   :  { %450 = dma.done.wait [#allocation4], 256  }
 0x1f4   :  { %451 = vsyncadd [#allocation4], 4294967040 }
 0x1f5   :  { %280 = vsyncpa [#allocation3], 1 }
 0x1f6   :  { %281 = vsyncpa [#allocation6], 1 }
 0x1f7   :  { %282 = vsyncpa [#allocation4], 1 }

</bundles_post_ra>
